<compile_context>
chip_gen: v5e
topology: v5e:2x2
jax: 0.10.0
libtpu: 0.0.40
codegen_flags: <defaults>
</compile_context>

<pallas_src>
import numpy as np
import jax
import jax.numpy as jnp
from jax.experimental import pallas as pl
from jax.experimental.pallas import tpu as pltpu

_LANE = 128


def _round_up(x, m):
    return ((x + m - 1) // m) * m


# --------------------------------------------------------------------------- #
# Kernel
# --------------------------------------------------------------------------- #
def _mlp_kernel(*refs):
    """refs = (z_ref, w0, b0, w1, b1, ..., w_{L-1}, b_{L-1}, out_ref)."""
    z_ref, out_ref = refs[0], refs[-1]
    wb = refs[1:-1]
    n_layers = len(wb) // 2

    compute_dtype = z_ref.dtype              # MXU operand dtype (bf16 stays bf16)
    h = z_ref[...]
    for layer in range(n_layers):
        w = wb[2 * layer][...]
        b = wb[2 * layer + 1][...]
        # MXU matmul in the operand dtype, accumulated in f32.
        acc = jnp.dot(h, w, preferred_element_type=jnp.float32)
        acc = acc + b.astype(jnp.float32)    # bias add in f32 (VPU)
        if layer < n_layers - 1:             # tanh on every layer except the last
            acc = jnp.tanh(acc)              # f32 transcendental (EUP)
            h = acc.astype(compute_dtype)    # back to operand dtype for next MXU pass
        else:
            h = acc
    out_ref[...] = h.astype(out_ref.dtype)


# --------------------------------------------------------------------------- #
# One-time parameter preparation (hoisted out of the per-RHS-call path)
# --------------------------------------------------------------------------- #
def prepare_params(weights, biases, compute_dtype=None):
    """Cast params to the compute dtype and zero-pad every *hidden* width up to
    a multiple of 128.  The first layer's input dim and the last layer's output
    dim stay unpadded, so z needs no column pad and the output needs no column
    slice per call.  weights[i] == torch Linear.weight.T, shape (in, out);
    biases[i] shape (1, out) or (out,)."""
    compute_dtype = compute_dtype or weights[0].dtype
    n = len(weights)
    dims = [weights[0].shape[0]] + [w.shape[1] for w in weights]
    pdims = list(dims)
    for i in range(1, n):                      # pad hidden widths only
        pdims[i] = _round_up(dims[i], _LANE)

    pweights, pbiases = [], []
    for i, (w, b) in enumerate(zip(weights, biases)):
        w = jnp.asarray(w, compute_dtype)
        b = jnp.asarray(b, compute_dtype).reshape(1, -1)
        # Zero fill (required: padded K rows must not contaminate later layers).
        w = jnp.pad(w, ((0, pdims[i] - dims[i]), (0, pdims[i + 1] - dims[i + 1])))
        b = jnp.pad(b, ((0, 0), (0, pdims[i + 1] - dims[i + 1])))
        pweights.append(w)
        pbiases.append(b)
    return pweights, pbiases


# --------------------------------------------------------------------------- #
# Forward on prepared (padded) params — the hot per-RHS-call path
# --------------------------------------------------------------------------- #
def _latent_ode_f_prepared(t, z, pweights, pbiases, *, batch_tile=256):
    del t  # unused by the math (as in the reference module)

    B, in_dim = z.shape
    assert in_dim == pweights[0].shape[0], "z feature dim mismatch"
    out_dim = pweights[-1].shape[1]
    compute_dtype = pweights[0].dtype
    if z.dtype != compute_dtype:
        z = z.astype(compute_dtype)

    # Sublane packing quantum: 8 rows (f32), 16 (bf16), ...
    quantum = max(8, 32 // jnp.dtype(compute_dtype).itemsize)

    if B <= quantum:
        tile = B                                  # full-array block (legal as-is)
    else:
        tile = min(batch_tile, _round_up(B, quantum))
        # Ensure >= 2 grid steps so v7x's two TensorCores both get work.
        tile = min(tile, _round_up((B + 1) // 2, quantum))
        tile = max(quantum, (tile // quantum) * quantum)
    n_steps = pl.cdiv(B, tile)                    # ragged last block: masked by Pallas

    in_specs = [pl.BlockSpec((tile, in_dim), lambda i: (i, 0))]
    flat_params = []
    for w, b in zip(pweights, pbiases):
        # Constant block index => Pallas DMAs each weight/bias only once per call.
        in_specs.append(pl.BlockSpec(w.shape, lambda i: (0, 0)))
        in_specs.append(pl.BlockSpec(b.shape, lambda i: (0, 0)))
        flat_params.extend([w, b])

    return pl.pallas_call(
        _mlp_kernel,
        out_shape=jax.ShapeDtypeStruct((B, out_dim), compute_dtype),
        grid=(n_steps,),
        in_specs=in_specs,
        out_specs=pl.BlockSpec((tile, out_dim), lambda i: (i, 0)),
        compiler_params=pltpu.CompilerParams(
            # Batch axis shards across TensorCores on v7x when n_steps >= 2.
            dimension_semantics=("parallel",),
        ),
    )(z, *flat_params)


def make_latent_ode_f(weights, biases, *, compute_dtype=None, batch_tile=256):
    """Factory for ODE solving: pads/casts params ONCE and returns a jitted
    f(t, z) -> dz/dt that only runs the pallas_call per RHS evaluation."""
    pweights, pbiases = prepare_params(weights, biases, compute_dtype)

    @jax.jit
    def ode_f(t, z):
        return _latent_ode_f_prepared(t, z, pweights, pbiases, batch_tile=batch_tile)

    return ode_f


def latent_ode_f(t, z, weights, biases, *, compute_dtype=None, batch_tile=256):
    """One-off convenience mirroring LatentOdeF.forward(t, z).  For repeated RHS
    evaluations inside a solver, use make_latent_ode_f (hoists the padding)."""
    pweights, pbiases = prepare_params(weights, biases, compute_dtype or z.dtype)
    return _latent_ode_f_prepared(t, z, pweights, pbiases, batch_tile=batch_tile)


# --------------------------------------------------------------------------- #
# Reference init / forward (faithful to the PyTorch module)
# --------------------------------------------------------------------------- #
def init_params(layers, key):
    """Mirrors the PyTorch __init__: xavier_uniform hidden weights, zero-filled
    last-layer weights, default nn.Linear bias init U(-1/sqrt(fan_in), +)."""
    weights, biases = [], []
    n_lin = len(layers) - 1
    for li in range(n_lin):
        fan_in, fan_out = layers[li], layers[li + 1]
        key, kw, kb = jax.random.split(key, 3)
        if li < n_lin - 1:
            bound = (6.0 / (fan_in + fan_out)) ** 0.5          # xavier_uniform_
            w = jax.random.uniform(kw, (fan_in, fan_out), jnp.float32, -bound, bound)
        else:
            w = jnp.zeros((fan_in, fan_out), jnp.float32)      # .fill_(0)
        b_bound = 1.0 / (fan_in ** 0.5)
        b = jax.random.uniform(kb, (1, fan_out), jnp.float32, -b_bound, b_bound)
        weights.append(w)
        biases.append(b)
    return weights, biases


def reference_forward(z, weights, biases):
    h = np.asarray(z, np.float32)
    ws = [np.asarray(w, np.float32) for w in weights]
    bs = [np.asarray(b, np.float32).reshape(1, -1) for b in biases]
    for i in range(len(ws) - 1):
        h = np.tanh(h @ ws[i] + bs[i])
    return h @ ws[-1] + bs[-1]


# TODO(synk): the module's `self.nfe` evaluation counter is host-side stateful
# bookkeeping, not part of the math; it has no in-kernel equivalent.

if __name__ == "__main__":
    layers = [16, 64, 64, 16]        # latent dim -> hidden -> hidden -> grad dim
    batch = 200                      # deliberately NOT a multiple of the tile
    key = jax.random.PRNGKey(0)
    key, kz = jax.random.split(key)
    z = jax.random.normal(kz, (batch, layers[0]), jnp.float32)
    t = jnp.float32(0.0)             # unused by forward, kept for parity

    # (a) faithful module init (zeroed last layer), f32 compute; the tile
    #     selection yields >= 2 grid steps (v7x megacore path) and a ragged
    #     last block handled by Pallas masking (no wrapper pad/slice).
    weights, biases = init_params(layers, key)
    ode_f = make_latent_ode_f(weights, biases)      # padding/casting hoisted
    grad = jax.block_until_ready(ode_f(t, z))
    assert grad.shape == (batch, layers[-1])
    ref = reference_forward(z, weights, biases)
    assert np.allclose(np.asarray(grad, np.float32), ref, atol=2e-3, rtol=2e-3)

    # (b) fully random weights (exercises every matmul, not just the zeroed
    #     last layer) with bf16 compute (bf16 MXU operands, f32 accumulator)
    #     and a small tile so the grid has 4 parallel steps.
    key, kw = jax.random.split(key)
    rand_w = [0.3 * jax.random.normal(k, w.shape, jnp.float32)
              for k, w in zip(jax.random.split(kw, len(weights)), weights)]
    ode_f_bf16 = make_latent_ode_f(rand_w, biases,
                                   compute_dtype=jnp.bfloat16, batch_tile=64)
    grad2 = jax.block_until_ready(ode_f_bf16(t, z.astype(jnp.bfloat16)))
    assert grad2.shape == (batch, layers[-1])
    w_bf = [np.asarray(jnp.asarray(w, jnp.bfloat16).astype(jnp.float32)) for w in rand_w]
    b_bf = [np.asarray(jnp.asarray(b, jnp.bfloat16).astype(jnp.float32)) for b in biases]
    z_bf = np.asarray(z.astype(jnp.bfloat16).astype(jnp.float32))
    ref2 = reference_forward(z_bf, w_bf, b_bf)
    grad2_f = np.asarray(grad2.astype(jnp.float32))
    assert np.allclose(grad2_f, ref2, atol=5e-2, rtol=5e-2)

    print("KERNEL_OK")
</pallas_src>

<mosaic_0001>
module attributes {stable_mosaic.version = 11 : i64} {
  func.func @_mlp_kernel(%arg0: i32, %arg1: memref<104x16xf32, #tpu.memory_space<vmem>>, %arg2: memref<16x128xf32, #tpu.memory_space<vmem>>, %arg3: memref<1x128xf32, #tpu.memory_space<vmem>>, %arg4: memref<128x128xf32, #tpu.memory_space<vmem>>, %arg5: memref<1x128xf32, #tpu.memory_space<vmem>>, %arg6: memref<128x16xf32, #tpu.memory_space<vmem>>, %arg7: memref<1x16xf32, #tpu.memory_space<vmem>>, %arg8: memref<104x16xf32, #tpu.memory_space<vmem>>) attributes {dimension_semantics = [#tpu.dimension_semantics<parallel>], iteration_bounds = array<i64: 2>, scalar_prefetch = 0 : i64, scratch_operands = 0 : i64, tpu.core_type = #tpu.core_type<tc>, window_params = [{transform_indices = @transform_0, window_bounds = array<i64: 104, 16>}, {pipeline_mode = #tpu.pipeline_mode<synchronous>, transform_indices = @transform_1, window_bounds = array<i64: 16, 128>}, {pipeline_mode = #tpu.pipeline_mode<synchronous>, transform_indices = @transform_2, window_bounds = array<i64: 1, 128>}, {pipeline_mode = #tpu.pipeline_mode<synchronous>, transform_indices = @transform_3, window_bounds = array<i64: 128, 128>}, {pipeline_mode = #tpu.pipeline_mode<synchronous>, transform_indices = @transform_4, window_bounds = array<i64: 1, 128>}, {pipeline_mode = #tpu.pipeline_mode<synchronous>, transform_indices = @transform_5, window_bounds = array<i64: 128, 16>}, {pipeline_mode = #tpu.pipeline_mode<synchronous>, transform_indices = @transform_6, window_bounds = array<i64: 1, 16>}, {transform_indices = @transform_7, window_bounds = array<i64: 104, 16>}]} {
    %c0 = arith.constant 0 : index
    %c0_0 = arith.constant 0 : index
    %0 = vector.load %arg1[%c0, %c0_0] : memref<104x16xf32, #tpu.memory_space<vmem>>, vector<104x16xf32>
    %c0_1 = arith.constant 0 : index
    %c0_2 = arith.constant 0 : index
    %1 = vector.load %arg2[%c0_1, %c0_2] : memref<16x128xf32, #tpu.memory_space<vmem>>, vector<16x128xf32>
    %c0_3 = arith.constant 0 : index
    %c0_4 = arith.constant 0 : index
    %2 = vector.load %arg3[%c0_3, %c0_4] : memref<1x128xf32, #tpu.memory_space<vmem>>, vector<1x128xf32>
    %cst = arith.constant dense<0.000000e+00> : vector<104x128xf32>
    %3 = tpu.matmul %0, %1, %cst {dimension_numbers = #tpu.dot_dimension_numbers<[1], [0], [0], [1], [0, 0, 1, 1], [], []>} : vector<104x16xf32>, vector<16x128xf32>, vector<104x128xf32> -> vector<104x128xf32>
    %4 = vector.broadcast %2 : vector<1x128xf32> to vector<104x128xf32>
    %5 = arith.addf %3, %4 : vector<104x128xf32>
    %6 = math.tanh %5 : vector<104x128xf32>
    %c0_5 = arith.constant 0 : index
    %c0_6 = arith.constant 0 : index
    %7 = vector.load %arg4[%c0_5, %c0_6] : memref<128x128xf32, #tpu.memory_space<vmem>>, vector<128x128xf32>
    %c0_7 = arith.constant 0 : index
    %c0_8 = arith.constant 0 : index
    %8 = vector.load %arg5[%c0_7, %c0_8] : memref<1x128xf32, #tpu.memory_space<vmem>>, vector<1x128xf32>
    %cst_9 = arith.constant dense<0.000000e+00> : vector<104x128xf32>
    %9 = tpu.matmul %6, %7, %cst_9 {dimension_numbers = #tpu.dot_dimension_numbers<[1], [0], [0], [1], [0, 0, 1, 1], [], []>} : vector<104x128xf32>, vector<128x128xf32>, vector<104x128xf32> -> vector<104x128xf32>
    %10 = vector.broadcast %8 : vector<1x128xf32> to vector<104x128xf32>
    %11 = arith.addf %9, %10 : vector<104x128xf32>
    %12 = math.tanh %11 : vector<104x128xf32>
    %c0_10 = arith.constant 0 : index
    %c0_11 = arith.constant 0 : index
    %13 = vector.load %arg6[%c0_10, %c0_11] : memref<128x16xf32, #tpu.memory_space<vmem>>, vector<128x16xf32>
    %c0_12 = arith.constant 0 : index
    %c0_13 = arith.constant 0 : index
    %14 = vector.load %arg7[%c0_12, %c0_13] : memref<1x16xf32, #tpu.memory_space<vmem>>, vector<1x16xf32>
    %cst_14 = arith.constant dense<0.000000e+00> : vector<104x16xf32>
    %15 = tpu.matmul %12, %13, %cst_14 {dimension_numbers = #tpu.dot_dimension_numbers<[1], [0], [0], [1], [0, 0, 1, 1], [], []>} : vector<104x128xf32>, vector<128x16xf32>, vector<104x16xf32> -> vector<104x16xf32>
    %16 = vector.broadcast %14 : vector<1x16xf32> to vector<104x16xf32>
    %17 = arith.addf %15, %16 : vector<104x16xf32>
    %c0_15 = arith.constant 0 : index
    %c0_16 = arith.constant 0 : index
    %18 = vector.load %arg8[%c0_15, %c0_16] : memref<104x16xf32, #tpu.memory_space<vmem>>, vector<104x16xf32>
    tpu.vector_store %arg8[%c0_15, %c0_16], %17 {strides = array<i32>} : memref<104x16xf32, #tpu.memory_space<vmem>>, vector<104x16xf32>,
    return
  }
  func.func @transform_0(%arg0: i32) -> (i32, i32) {
    %c0_i32 = arith.constant 0 : i32
    %c0_i32_0 = arith.constant 0 : i32
    return %arg0, %c0_i32 : i32, i32
  }
  func.func @transform_1(%arg0: i32) -> (i32, i32) {
    %c0_i32 = arith.constant 0 : i32
    %c0_i32_0 = arith.constant 0 : i32
    %c0_i32_1 = arith.constant 0 : i32
    return %c0_i32, %c0_i32_0 : i32, i32
  }
  func.func @transform_2(%arg0: i32) -> (i32, i32) {
    %c0_i32 = arith.constant 0 : i32
    %c0_i32_0 = arith.constant 0 : i32
    %c0_i32_1 = arith.constant 0 : i32
    return %c0_i32, %c0_i32_0 : i32, i32
  }
  func.func @transform_3(%arg0: i32) -> (i32, i32) {
    %c0_i32 = arith.constant 0 : i32
    %c0_i32_0 = arith.constant 0 : i32
    %c0_i32_1 = arith.constant 0 : i32
    return %c0_i32, %c0_i32_0 : i32, i32
  }
  func.func @transform_4(%arg0: i32) -> (i32, i32) {
    %c0_i32 = arith.constant 0 : i32
    %c0_i32_0 = arith.constant 0 : i32
    %c0_i32_1 = arith.constant 0 : i32
    return %c0_i32, %c0_i32_0 : i32, i32
  }
  func.func @transform_5(%arg0: i32) -> (i32, i32) {
    %c0_i32 = arith.constant 0 : i32
    %c0_i32_0 = arith.constant 0 : i32
    %c0_i32_1 = arith.constant 0 : i32
    return %c0_i32, %c0_i32_0 : i32, i32
  }
  func.func @transform_6(%arg0: i32) -> (i32, i32) {
    %c0_i32 = arith.constant 0 : i32
    %c0_i32_0 = arith.constant 0 : i32
    %c0_i32_1 = arith.constant 0 : i32
    return %c0_i32, %c0_i32_0 : i32, i32
  }
  func.func @transform_7(%arg0: i32) -> (i32, i32) {
    %c0_i32 = arith.constant 0 : i32
    %c0_i32_0 = arith.constant 0 : i32
    return %arg0, %c0_i32 : i32, i32
  }
}

</mosaic_0001>

<bundles_post_ra>
// kernel: ode_f.1
= control target key start
LH: loop header
LB: loop body
LE: loop exit
PB: predicated region body
PF: predicated region fallthrough
CT: control target
= control target key end

     0   :  { %s1214_s24 = smov 0   ;;  %s1216_s25 = smov 0   ;;  %s1527_s0 = inlined_call_operand.vmem [shape: f32[200,16], index: 0, kind: input, shape index: {}]   ;;  %s1528_s1 = inlined_call_operand.vmem [shape: f32[16,128], index: 1, kind: input, shape index: {}]   ;;  %s1529_s2 = inlined_call_operand.vmem [shape: f32[1,128], index: 2, kind: input, shape index: {}]   ;;  %s1530_s3 = inlined_call_operand.vmem [shape: f32[128,128], index: 3, kind: input, shape index: {}]   ;;  %s1531_s4 = inlined_call_operand.vmem [shape: f32[1,128], index: 4, kind: input, shape index: {}]   ;;  %s1532_s5 = inlined_call_operand.vmem [shape: f32[128,16], index: 5, kind: input, shape index: {}]   ;;  %s1533_s6 = inlined_call_operand.vmem [shape: f32[1,16], index: 6, kind: input, shape index: {}]   ;;  %s1534_s7 = inlined_call_operand.vmem [shape: f32[200,16], index: 7, kind: output, shape index: {}]  }
   0x1   :  { %s1218_s26 = smov 0  }
   0x2 LB: > { %s1227_s27 = sadd.s32 4294967295, %s1140_s26   ;;  %s1229_s28 = sadd.s32 1, %s1140_s26   ;;  %s1140_s26 = sphi %s1218_s26, %s1543_s26   ;;  %s1136_s25 = sphi %s1216_s25, %s1542_s25   ;;  %s1132_s24 = sphi %s1214_s24, %s1541_s24  }
   0x3   : > { %s173_s29 = ssub.s32 %s1140_s26, %s1229_s28  ;;  %s176_s30 = sadd.s32 1, %s1136_s25 }
   0x4   : > { %p174_p0 = scmp.eq.s32.totalorder %s173_s29, 0  ;;  %p186_p1 = scmp.ne.s32.totalorder %s1136_s25, %s1132_s24 }
   0x5   : > { %p187_p2 = scmp.eq.s32.totalorder %s1227_s27, 1  ;;  %p875_p3 = scmp.ge.s32.totalorder %s1140_s26, 1 }
   0x6   : > { %s1237_s8 = scalar_select %p174_p0, %s1136_s25, %s176_s30  }
   0x7   : > { %p1239_p4 = por %p187_p2, %p186_p1  ;;  %p246_p5 = scmp.lt.s32.totalorder %s1140_s26, 3 }
   0x9   : > { %p247_p6 = pnand %p875_p3, %p246_p5 }
   0xa   : > { %s1250_s14 = smul.u32 (!%p247_p6), 13, %s1227_s27  ;;  %s278_s29 = sand.u32 (!%p247_p6), 1, %s1132_s24  }
   0xb   : > { %250 = sbr.rel (%p247_p6) target bundleno = 588 (0x24c), region = 48 }
   0xc   : > { %p286_p7 = scmp.lt.s32.totalorder (!%p247_p6), %s1250_s14, 24  ;;  %s935_s30 = smul.u32 (!%p247_p6), 104, %s278_s29 }
   0xe   : > { %s1406_s12 = scalar_lea.vmem (!%p247_p6), [#allocation2], %s935_s30  }
  0x10   : > { %v314_v0 = vld [vmem:[%s1528_s1 + $0x8] sm:$0xff]  ;;  %v313_v1 = vld [vmem:[%s1528_s1] sm:$0xff]  ;;  %s287_s15 = scalar_select %p286_p7, %s1250_s14, 24  ;;  %vm319_vm0 = vcmask 130048   ;;  %v443_v11 = vld [vmem:[%s1530_s3 + $0x78] sm:$0xff] }
  0x11   : > { %373 = vmatpush.msra.mxu0 %v314_v0  ;;  %v442_v12 = vld [vmem:[%s1530_s3 + $0x70] sm:$0xff]  ;;  %448 = vmatpush.msra.mxu1 %v443_v11  ;;  %v441_v13 = vld [vmem:[%s1530_s3 + $0x68] sm:$0xff]  ;;  %v440_v14 = vld [vmem:[%s1530_s3 + $0x60] sm:$0xff]  ;;  %s614_s24 = ssub.s32 (%p1239_p4), 25, %s1250_s14  ;;  %s902_s13 = smul.u32 (%p1239_p4), 104, %s1227_s27 }
  0x12   : > { %s876_s16 = sshll.u32 %s287_s15, 3  ;;  %903 = vmatpush.msra.mxu3 %v443_v11  ;;  %v439_v16 = vld [vmem:[%s1530_s3 + $0x58] sm:$0xff]  ;;  %v438_v17 = vld [vmem:[%s1530_s3 + $0x50] sm:$0xff]  ;;  %v437_v18 = vld [vmem:[%s1530_s3 + $0x48] sm:$0xff]  ;;  %p615_p8 = scmp.lt.s32.totalorder (%p1239_p4), %s614_s24, 13 }
  0x13   : > { %374 = vmatpush.msra.mxu0 %v313_v1  ;;  %s1257_s19 = scalar_lea.vmem %s1527_s0, %s876_s16  ;;  %449 = vmatpush.msra.mxu1 %v442_v12  ;;  %v436_v19 = vld [vmem:[%s1530_s3 + $0x40] sm:$0xff]  ;;  %v435_v21 = vld [vmem:[%s1530_s3 + $0x38] sm:$0xff]  ;;  %v434_v22 = vld [vmem:[%s1530_s3 + $0x30] sm:$0xff]  ;;  %s1441_s17 = scalar_lea.vmem (%p1239_p4), %s1534_s7, %s902_s13  }
  0x14   : > { %v300_v2 = vld [vmem:[%s1257_s19] sm:$0xff]  ;;  %v301_v3 = vld [vmem:[%s1257_s19 + $0x8] sm:$0xff]  ;;  %v302_v4 = vld [vmem:[%s1257_s19 + $0x10] sm:$0xff]  ;;  %904 = vmatpush.msra.mxu3 %v442_v12 }
  0x15   : > { %877 = vmatmul.msk.f32.vlgmr.msra.gmra.mxu0 %vm319_vm0, %v300_v2  ;;  %v303_v5 = vld [vmem:[%s1257_s19 + $0x18] sm:$0xff]  ;;  %v304_v6 = vld [vmem:[%s1257_s19 + $0x20] sm:$0xff]  ;;  %v305_v7 = vld [vmem:[%s1257_s19 + $0x28] sm:$0xff]  ;;  %450 = vmatpush.msra.mxu1 %v441_v13 }
  0x16   : > { %v306_v8 = vld [vmem:[%s1257_s19 + $0x30] sm:$0xff]  ;;  %v307_v9 = vld [vmem:[%s1257_s19 + $0x38] sm:$0xff]  ;;  %v308_v10 = vld [vmem:[%s1257_s19 + $0x40] sm:$0xff]  ;;  %905 = vmatpush.msra.mxu3 %v441_v13 }
  0x17   : > { %v309_v15 = vld [vmem:[%s1257_s19 + $0x48] sm:$0xff]  ;;  %451 = vmatpush.msra.mxu1 %v440_v14  ;;  %v310_v20 = vld [vmem:[%s1257_s19 + $0x50] sm:$0xff]  ;;  %v311_v24 = vld [vmem:[%s1257_s19 + $0x58] sm:$0xff] }
  0x18   : > { %906 = vmatpush.msra.mxu3 %v440_v14  ;;  %v433_v23 = vld [vmem:[%s1530_s3 + $0x28] sm:$0xff]  ;;  %v312_v25 = vld [vmem:[%s1257_s19 + $0x60] sm:$0xff]  ;;  %v431_v27 = vld [vmem:[%s1530_s3 + $0x18] sm:$0xff] }
  0x19   : > { %452 = vmatpush.msra.mxu1 %v439_v16  ;;  %v432_v26 = vld [vmem:[%s1530_s3 + $0x20] sm:$0xff]  ;;  %v430_v28 = vld [vmem:[%s1530_s3 + $0x10] sm:$0xff]  ;;  %v429_v29 = vld [vmem:[%s1530_s3 + $0x8] sm:$0xff] }
  0x1a   : > { %907 = vmatpush.msra.mxu3 %v439_v16  ;;  %v428_v30 = vld [vmem:[%s1530_s3] sm:$0xff]  ;;  %v532_v61 = vld [vmem:[%s1532_s5 + $0x78] sm:$0xff]  ;;  %v531_v62 = vld [vmem:[%s1532_s5 + $0x70] sm:$0xff] }
  0x1b   : > { %453 = vmatpush.msra.mxu1 %v438_v17  ;;  %v1336_v31 = vld [vmem:[%s1529_s2] ss:$0 sm:$0xff]  ;;  %537 = vmatpush.msra.mxu2 %v532_v61  ;;  %v530_v63 = vld [vmem:[%s1532_s5 + $0x68] sm:$0xff]  ;;  %v528_v2 = vld [vmem:[%s1532_s5 + $0x58] sm:$0xff] }
  0x1c   : > { %908 = vmatpush.msra.mxu3 %v438_v17  ;;  %v529_v0 = vld [vmem:[%s1532_s5 + $0x60] sm:$0xff]  ;;  %v523_v12 = vld [vmem:[%s1532_s5 + $0x30] sm:$0xff]  ;;  %v522_v13 = vld [vmem:[%s1532_s5 + $0x28] sm:$0xff] }
  0x1d   : > { %878 = vmatmul.msk.f32.gmra.mxu0 %vm319_vm0, %v301_v3  ;;  %454 = vmatpush.msra.mxu1 %v437_v18  ;;  %v521_v17 = vld [vmem:[%s1532_s5 + $0x20] sm:$0xff] }
  0x1e   : > { %909 = vmatpush.msra.mxu3 %v437_v18  ;;  %538 = vmatpush.msra.mxu2 %v531_v62 }
  0x1f   : > { %455 = vmatpush.msra.mxu1 %v436_v19 }
  0x20   : > { %910 = vmatpush.msra.mxu3 %v436_v19  ;;  %539 = vmatpush.msra.mxu2 %v530_v63  ;;  %v520_v19 = vld [vmem:[%s1532_s5 + $0x18] sm:$0xff] }
  0x21   : > { %456 = vmatpush.msra.mxu1 %v435_v21 }
  0x22   : > { %911 = vmatpush.msra.mxu3 %v435_v21  ;;  %540 = vmatpush.msra.mxu2 %v529_v0  ;;  %v518_v21 = vld [vmem:[%s1532_s5 + $0x8] sm:$0xff] }
  0x23   : > { %457 = vmatpush.msra.mxu1 %v434_v22 }
  0x24   : > { %912 = vmatpush.msra.mxu3 %v434_v22  ;;  %541 = vmatpush.msra.mxu2 %v528_v2  ;;  %v517_v22 = vld [vmem:[%s1532_s5] sm:$0xff] }
  0x25   : > { %879 = vmatmul.msk.f32.gmra.mxu0 %vm319_vm0, %v302_v4  ;;  %458 = vmatpush.msra.mxu1 %v433_v23 }
  0x26   : > { %913 = vmatpush.msra.mxu3 %v433_v23  ;;  %v1026_v23 = vld [vmem:[%s1531_s4] ss:$0 sm:$0xff] }
  0x27   : > { %459 = vmatpush.msra.mxu1 %v432_v26 }
  0x28   : > { %914 = vmatpush.msra.mxu3 %v432_v26 }
  0x29   : > { %460 = vmatpush.msra.mxu1 %v431_v27 }
  0x2a   : > { %915 = vmatpush.msra.mxu3 %v431_v27 }
  0x2b   : > { %461 = vmatpush.msra.mxu1 %v430_v28 }
  0x2c   : > { %916 = vmatpush.msra.mxu3 %v430_v28 }
  0x2d   : > { %880 = vmatmul.msk.f32.gmra.mxu0 %vm319_vm0, %v303_v5  ;;  %462 = vmatpush.msra.mxu1 %v429_v29  ;;  %v527_v5 = vld [vmem:[%s1532_s5 + $0x50] sm:$0xff] }
  0x2e   : > { %917 = vmatpush.msra.mxu3 %v429_v29  ;;  %542 = vmatpush.msra.mxu2 %v527_v5 }
  0x2f   : > { %463 = vmatpush.msra.mxu1 %v428_v30 }
  0x30   : > { %918 = vmatpush.msra.mxu3 %v428_v30 }
  0x32   : > { %919 = vmatpush.msrb.mxu3 %v532_v61 }
  0x34   : > { %920 = vmatpush.msrb.mxu3 %v531_v62 }
  0x35   : > { %881 = vmatmul.msk.f32.gmra.mxu0 %vm319_vm0, %v304_v6  ;;  %v526_v6 = vld [vmem:[%s1532_s5 + $0x48] sm:$0xff] }
  0x36   : > { %921 = vmatpush.msrb.mxu3 %v530_v63  ;;  %543 = vmatpush.msra.mxu2 %v526_v6  ;;  %v1027_v63 = vld [vmem:[%s1533_s6] ss:$0 sm:$0xff] }
  0x38   : > { %922 = vmatpush.msrb.mxu3 %v529_v0 }
  0x3a   : > { %923 = vmatpush.msrb.mxu3 %v528_v2 }
  0x3c   : > { %924 = vmatpush.msrb.mxu3 %v527_v5 }
  0x3d   : > { %882 = vmatmul.msk.f32.gmra.mxu0 %vm319_vm0, %v305_v7  ;;  %v525_v7 = vld [vmem:[%s1532_s5 + $0x40] sm:$0xff] }
  0x3e   : > { %925 = vmatpush.msrb.mxu3 %v526_v6  ;;  %544 = vmatpush.msra.mxu2 %v525_v7 }
  0x40   : > { %926 = vmatpush.msrb.mxu3 %v525_v7 }
  0x45   : > { %883 = vmatmul.msk.f32.gmra.mxu0 %vm319_vm0, %v306_v8 }
  0x4d   : > { %884 = vmatmul.msk.f32.gmra.mxu0 %vm319_vm0, %v307_v9  ;;  %v524_v9 = vld [vmem:[%s1532_s5 + $0x38] sm:$0xff] }
  0x4e   : > { %545 = vmatpush.msra.mxu2 %v524_v9  ;;  %927 = vmatpush.msrb.mxu3 %v524_v9 }
  0x50   : > { %546 = vmatpush.msra.mxu2 %v523_v12  ;;  %928 = vmatpush.msrb.mxu3 %v523_v12 }
  0x52   : > { %547 = vmatpush.msra.mxu2 %v522_v13  ;;  %929 = vmatpush.msrb.mxu3 %v522_v13 }
  0x54   : > { %548 = vmatpush.msra.mxu2 %v521_v17  ;;  %930 = vmatpush.msrb.mxu3 %v521_v17 }
  0x55   : > { %885 = vmatmul.msk.f32.gmra.mxu0 %vm319_vm0, %v308_v10 }
  0x56   : > { %549 = vmatpush.msra.mxu2 %v520_v19  ;;  %931 = vmatpush.msrb.mxu3 %v520_v19 }
  0x5d   : > { %886 = vmatmul.msk.f32.gmra.mxu0 %vm319_vm0, %v309_v15 }
  0x65   : > { %887 = vmatmul.msk.f32.gmra.mxu0 %vm319_vm0, %v310_v20  ;;  %v519_v20 = vld [vmem:[%s1532_s5 + $0x10] sm:$0xff] }
  0x66   : > { %550 = vmatpush.msra.mxu2 %v519_v20  ;;  %932 = vmatpush.msrb.mxu3 %v519_v20 }
  0x68   : > { %551 = vmatpush.msra.mxu2 %v518_v21  ;;  %933 = vmatpush.msrb.mxu3 %v518_v21 }
  0x6a   : > { %552 = vmatpush.msra.mxu2 %v517_v22  ;;  %934 = vmatpush.msrb.mxu3 %v517_v22 }
  0x6d   : > { %888 = vmatmul.msk.f32.gmra.mxu0 %vm319_vm0, %v311_v24 }
  0x75   : > { %889 = vmatmul.msk.f32.gmra.mxu0 %vm319_vm0, %v312_v25 }
  0x92   : > { %v376_v32 = vpop.f32.mrf.mxu0 }
  0x93   : > { %v377_v33 = vadd.f32 %v1336_v31, %v376_v32 }
  0x95   : > { %1028 = vtanh.f32 %v377_v33 }
  0x9a   : > { %v379_v34 = vpop.f32.mrf.mxu0 }
  0x9b   : > { %v1029_v35 = vpop.eup %1028  ;;  %v380_v36 = vadd.f32 %v1336_v31, %v379_v34 }
  0x9c   : > { %464 = vmatmul.f32.vlgmr.msra.gmra.mxu1 %v1029_v35 }
  0x9d   : > { %1030 = vtanh.f32 %v380_v36 }
  0xa2   : > { %v382_v37 = vpop.f32.mrf.mxu0 }
  0xa3   : > { %v1031_v38 = vpop.eup %1030  ;;  %v383_v39 = vadd.f32 %v1336_v31, %v382_v37 }
  0xa4   : > { %467 = vmatmul.f32.gmra.mxu1 %v1031_v38 }
  0xa5   : > { %1032 = vtanh.f32 %v383_v39 }
  0xaa   : > { %v385_v40 = vpop.f32.mrf.mxu0 }
  0xab   : > { %v1033_v41 = vpop.eup %1032  ;;  %v386_v42 = vadd.f32 %v1336_v31, %v385_v40 }
  0xac   : > { %470 = vmatmul.f32.gmra.mxu1 %v1033_v41 }
  0xad   : > { %1034 = vtanh.f32 %v386_v42 }
  0xb2   : > { %v388_v43 = vpop.f32.mrf.mxu0 }
  0xb3   : > { %v1035_v44 = vpop.eup %1034  ;;  %v389_v45 = vadd.f32 %v1336_v31, %v388_v43 }
  0xb4   : > { %473 = vmatmul.f32.gmra.mxu1 %v1035_v44 }
  0xb5   : > { %1036 = vtanh.f32 %v389_v45 }
  0xba   : > { %v391_v46 = vpop.f32.mrf.mxu0 }
  0xbb   : > { %v1037_v47 = vpop.eup %1036  ;;  %v392_v48 = vadd.f32 %v1336_v31, %v391_v46 }
  0xbc   : > { %476 = vmatmul.f32.gmra.mxu1 %v1037_v47 }
  0xbd   : > { %1038 = vtanh.f32 %v392_v48 }
  0xc2   : > { %v394_v49 = vpop.f32.mrf.mxu0 }
  0xc3   : > { %v1039_v50 = vpop.eup %1038  ;;  %v395_v51 = vadd.f32 %v1336_v31, %v394_v49 }
  0xc4   : > { %479 = vmatmul.f32.gmra.mxu1 %v1039_v50 }
  0xc5   : > { %1040 = vtanh.f32 %v395_v51 }
  0xca   : > { %v397_v52 = vpop.f32.mrf.mxu0 }
  0xcb   : > { %v1041_v53 = vpop.eup %1040  ;;  %v398_v54 = vadd.f32 %v1336_v31, %v397_v52 }
  0xcc   : > { %482 = vmatmul.f32.gmra.mxu1 %v1041_v53 }
  0xcd   : > { %1042 = vtanh.f32 %v398_v54 }
  0xd2   : > { %v400_v55 = vpop.f32.mrf.mxu0 }
  0xd3   : > { %v1043_v56 = vpop.eup %1042  ;;  %v401_v57 = vadd.f32 %v1336_v31, %v400_v55 }
  0xd4   : > { %485 = vmatmul.f32.gmra.mxu1 %v1043_v56 }
  0xd5   : > { %1044 = vtanh.f32 %v401_v57 }
  0xda   : > { %v403_v58 = vpop.f32.mrf.mxu0 }
  0xdb   : > { %v1045_v59 = vpop.eup %1044  ;;  %v404_v60 = vadd.f32 %v1336_v31, %v403_v58 }
  0xdc   : > { %488 = vmatmul.f32.gmra.mxu1 %v1045_v59 }
  0xdd   : > { %1046 = vtanh.f32 %v404_v60 }
  0xe2   : > { %v406_v1 = vpop.f32.mrf.mxu0 }
  0xe3   : > { %v1047_v3 = vpop.eup %1046  ;;  %v407_v4 = vadd.f32 %v1336_v31, %v406_v1 }
  0xe4   : > { %491 = vmatmul.f32.vlgmr.msra.gmra.mxu3 %v1047_v3 }
  0xe5   : > { %1048 = vtanh.f32 %v407_v4 }
  0xea   : > { %v409_v8 = vpop.f32.mrf.mxu0 }
  0xeb   : > { %v1049_v10 = vpop.eup %1048  ;;  %v410_v11 = vadd.f32 %v1336_v31, %v409_v8 }
  0xec   : > { %494 = vmatmul.f32.gmra.mxu3 %v1049_v10 }
  0xed   : > { %1050 = vtanh.f32 %v410_v11 }
  0xf2   : > { %v412_v14 = vpop.f32.mrf.mxu0 }
  0xf3   : > { %v1051_v15 = vpop.eup %1050  ;;  %v413_v16 = vadd.f32 %v1336_v31, %v412_v14 }
  0xf4   : > { %497 = vmatmul.f32.gmra.mxu3 %v1051_v15 }
  0xf5   : > { %1052 = vtanh.f32 %v413_v16 }
  0xfb   : > { %v1053_v18 = vpop.eup %1052 }
  0xfc   : > { %500 = vmatmul.f32.gmra.mxu3 %v1053_v18 }
 0x119   : > { %v465_v24 = vpop.f32.mrf.mxu1 }
 0x11a   : > { %v466_v25 = vadd.f32 %v1026_v23, %v465_v24 }
 0x11c   : > { %1054 = vtanh.f32 %v466_v25 }
 0x121   : > { %v468_v26 = vpop.f32.mrf.mxu1 }
 0x122   : > { %v1055_v27 = vpop.eup %1054  ;;  %v469_v28 = vadd.f32 %v1026_v23, %v468_v26 }
 0x123   : > { %553 = vmatmul.f32.vlgmr.msra.gmra.mxu2 %v1055_v27 }
 0x124   : > { %1056 = vtanh.f32 %v469_v28 }
 0x129   : > { %v471_v29 = vpop.f32.mrf.mxu1 }
 0x12a   : > { %v1057_v30 = vpop.eup %1056  ;;  %v472_v31 = vadd.f32 %v1026_v23, %v471_v29 }
 0x12b   : > { %556 = vmatmul.f32.gmra.mxu2 %v1057_v30 }
 0x12c   : > { %1058 = vtanh.f32 %v472_v31 }
 0x131   : > { %v474_v32 = vpop.f32.mrf.mxu1 }
 0x132   : > { %v1059_v33 = vpop.eup %1058  ;;  %v475_v34 = vadd.f32 %v1026_v23, %v474_v32 }
 0x133   : > { %559 = vmatmul.f32.gmra.mxu2 %v1059_v33 }
 0x134   : > { %1060 = vtanh.f32 %v475_v34 }
 0x139   : > { %v477_v35 = vpop.f32.mrf.mxu1 }
 0x13a   : > { %v1061_v36 = vpop.eup %1060  ;;  %v478_v37 = vadd.f32 %v1026_v23, %v477_v35 }
 0x13b   : > { %562 = vmatmul.f32.gmra.mxu2 %v1061_v36 }
 0x13c   : > { %1062 = vtanh.f32 %v478_v37 }
 0x141   : > { %v480_v38 = vpop.f32.mrf.mxu1 }
 0x142   : > { %v1063_v39 = vpop.eup %1062  ;;  %v481_v40 = vadd.f32 %v1026_v23, %v480_v38 }
 0x143   : > { %565 = vmatmul.f32.gmra.mxu2 %v1063_v39 }
 0x144   : > { %1064 = vtanh.f32 %v481_v40 }
 0x149   : > { %v483_v41 = vpop.f32.mrf.mxu1 }
 0x14a   : > { %v1065_v42 = vpop.eup %1064  ;;  %v484_v43 = vadd.f32 %v1026_v23, %v483_v41 }
 0x14b   : > { %568 = vmatmul.f32.gmra.mxu2 %v1065_v42 }
 0x14c   : > { %1066 = vtanh.f32 %v484_v43 }
 0x151   : > { %v486_v44 = vpop.f32.mrf.mxu1 }
 0x152   : > { %v1067_v45 = vpop.eup %1066  ;;  %v487_v46 = vadd.f32 %v1026_v23, %v486_v44 }
 0x153   : > { %571 = vmatmul.f32.gmra.mxu2 %v1067_v45 }
 0x154   : > { %1068 = vtanh.f32 %v487_v46 }
 0x159   : > { %v489_v47 = vpop.f32.mrf.mxu1 }
 0x15a   : > { %v1069_v48 = vpop.eup %1068  ;;  %v490_v49 = vadd.f32 %v1026_v23, %v489_v47 }
 0x15b   : > { %574 = vmatmul.f32.gmra.mxu2 %v1069_v48 }
 0x15c   : > { %1070 = vtanh.f32 %v490_v49 }
 0x162   : > { %v1071_v50 = vpop.eup %1070 }
 0x163   : > { %577 = vmatmul.f32.gmra.mxu2 %v1071_v50 }
 0x167   : > { %v492_v51 = vpop.f32.mrf.mxu3 }
 0x168   : > { %v493_v52 = vadd.f32 %v1026_v23, %v492_v51 }
 0x16a   : > { %1072 = vtanh.f32 %v493_v52 }
 0x16f   : > { %v495_v53 = vpop.f32.mrf.mxu3 }
 0x170   : > { %v1073_v54 = vpop.eup %1072  ;;  %v496_v55 = vadd.f32 %v1026_v23, %v495_v53 }
 0x171   : > { %580 = vmatmul.f32.vlgmr.msrb.gmra.mxu3 %v1073_v54 }
 0x172   : > { %1074 = vtanh.f32 %v496_v55 }
 0x177   : > { %v498_v56 = vpop.f32.mrf.mxu3 }
 0x178   : > { %v1075_v57 = vpop.eup %1074  ;;  %v499_v58 = vadd.f32 %v1026_v23, %v498_v56 }
 0x179   : > { %583 = vmatmul.f32.gmra.mxu3 %v1075_v57 }
 0x17a   : > { %1076 = vtanh.f32 %v499_v58 }
 0x17f   : > { %v501_v59 = vpop.f32.mrf.mxu3 }
 0x180   : > { %v1077_v60 = vpop.eup %1076  ;;  %v502_v61 = vadd.f32 %v1026_v23, %v501_v59 }
 0x181   : > { %586 = vmatmul.f32.gmra.mxu3 %v1077_v60 }
 0x182   : > { %1078 = vtanh.f32 %v502_v61 }
 0x188   : > { %v1079_v62 = vpop.eup %1078 }
 0x189   : > { %589 = vmatmul.f32.gmra.mxu3 %v1079_v62 }
 0x1a6   : > { %v554_v0 = vpop.f32.mrf.mxu2 }
 0x1a7   : > { %v555_v1 = vadd.f32 %v1027_v63, %v554_v0 }
 0x1a9   : > { %593 = vst.msk [vmem:[%s1406_s12] sm:$0xff] %vm319_vm0, %v555_v1 }
 0x1ae   : > { %v557_v2 = vpop.f32.mrf.mxu2 }
 0x1af   : > { %v558_v3 = vadd.f32 %v1027_v63, %v557_v2 }
 0x1b1   : > { %594 = vst.msk [vmem:[%s1406_s12 + $0x8] sm:$0xff] %vm319_vm0, %v558_v3 }
 0x1b6   : > { %v560_v4 = vpop.f32.mrf.mxu2 }
 0x1b7   : > { %v561_v5 = vadd.f32 %v1027_v63, %v560_v4 }
 0x1b9   : > { %595 = vst.msk [vmem:[%s1406_s12 + $0x10] sm:$0xff] %vm319_vm0, %v561_v5 }
 0x1be   : > { %v563_v6 = vpop.f32.mrf.mxu2 }
 0x1bf   : > { %v564_v7 = vadd.f32 %v1027_v63, %v563_v6 }
 0x1c1   : > { %596 = vst.msk [vmem:[%s1406_s12 + $0x18] sm:$0xff] %vm319_vm0, %v564_v7 }
 0x1c6   : > { %v566_v8 = vpop.f32.mrf.mxu2 }
 0x1c7   : > { %v567_v9 = vadd.f32 %v1027_v63, %v566_v8 }
 0x1c9   : > { %597 = vst.msk [vmem:[%s1406_s12 + $0x20] sm:$0xff] %vm319_vm0, %v567_v9 }
 0x1ce   : > { %v569_v10 = vpop.f32.mrf.mxu2 }
 0x1cf   : > { %v570_v11 = vadd.f32 %v1027_v63, %v569_v10 }
 0x1d1   : > { %598 = vst.msk [vmem:[%s1406_s12 + $0x28] sm:$0xff] %vm319_vm0, %v570_v11 }
 0x1d6   : > { %v572_v12 = vpop.f32.mrf.mxu2 }
 0x1d7   : > { %v573_v13 = vadd.f32 %v1027_v63, %v572_v12 }
 0x1d9   : > { %599 = vst.msk [vmem:[%s1406_s12 + $0x30] sm:$0xff] %vm319_vm0, %v573_v13 }
 0x1de   : > { %v575_v14 = vpop.f32.mrf.mxu2 }
 0x1df   : > { %v576_v15 = vadd.f32 %v1027_v63, %v575_v14 }
 0x1e1   : > { %600 = vst.msk [vmem:[%s1406_s12 + $0x38] sm:$0xff] %vm319_vm0, %v576_v15 }
 0x1e6   : > { %v578_v16 = vpop.f32.mrf.mxu2 }
 0x1e7   : > { %v579_v17 = vadd.f32 %v1027_v63, %v578_v16 }
 0x1e9   : > { %601 = vst.msk [vmem:[%s1406_s12 + $0x40] sm:$0xff] %vm319_vm0, %v579_v17 }
 0x1f4   : > { %v581_v18 = vpop.f32.mrf.mxu3 }
 0x1f5   : > { %v582_v19 = vadd.f32 %v1027_v63, %v581_v18 }
 0x1f7   : > { %602 = vst.msk [vmem:[%s1406_s12 + $0x48] sm:$0xff] %vm319_vm0, %v582_v19 }
 0x1fc   : > { %v584_v20 = vpop.f32.mrf.mxu3 }
 0x1fd   : > { %v585_v21 = vadd.f32 %v1027_v63, %v584_v20 }
 0x1ff   : > { %603 = vst.msk [vmem:[%s1406_s12 + $0x50] sm:$0xff] %vm319_vm0, %v585_v21 }
 0x204   : > { %v587_v22 = vpop.f32.mrf.mxu3 }
 0x205   : > { %v588_v23 = vadd.f32 %v1027_v63, %v587_v22 }
 0x207   : > { %604 = vst.msk [vmem:[%s1406_s12 + $0x58] sm:$0xff] %vm319_vm0, %v588_v23 }
 0x20b   : > { %612 = sbr.rel (!%p1239_p4) target bundleno = 588 (0x24c), region = 52 }
 0x20c   : > { %v590_v24 = vpop.f32.mrf.mxu3 }
 0x20d   : > { %v591_v25 = vadd.f32 %v1027_v63, %v590_v24 }
 0x20f   : > { %605 = vst.msk [vmem:[%s1406_s12 + $0x60] sm:$0xff] %vm319_vm0, %v591_v25 }
 0x210   : > { %s1545_s24 = smov (!%p615_p8, %s614_s24), 13 }
 0x211   : > { %s890_s18 = sshll.u32 %s1545_s24, 3 }
 0x212   : > { %p893_p9 = scmp.eq.s32.totalorder %s890_s18, 0 }
 0x213   : > { %1080 = sdivrem.u32 (!%p893_p9), %s1545_s24, 13 }
 0x214   : > { %623 = sbr.rel (%p893_p9) target bundleno = 588 (0x24c), region = 56 }
 0x21c   : > { %s1447_s9 = spop.drf %1080 }
 0x21d   : > { %s1082_s19 = spop.drf %1080  ;;  %p894_p10 = scmp.le.s32.totalorder %s1447_s9, 0 }
 0x21e   : > { %s1536_s27 = smov (!%p894_p10), %s1441_s17  ;;  %s1537_s14 = smov (!%p894_p10), %s1406_s12 }
 0x21f   : > { %828 = sbr.rel (%p894_p10) target bundleno = 562 (0x232), region = 132  ;;  %s1456_s20 = smov (!%p894_p10), 0  }
 0x220   : > { %s1458_s21 = smov (!%p894_p10), 0  }
 0x224 LB: >> { %v712_v26 = vld [vmem:[%s1148_s14] sm:$0xff]  ;;  %v714_v27 = vld [vmem:[%s1148_s14 + $0x8] sm:$0xff]  ;;  %v716_v28 = vld [vmem:[%s1148_s14 + $0x10] sm:$0xff]  ;;  %s738_s22 = sadd.s32 1, %s1152_s20  ;;  %s706_s21 = sadd.s32 1, %s1156_s21   ;;  %s1156_s21 = sphi %s1458_s21, %s706_s21   ;;  %s1152_s20 = sphi %s1456_s20, %s1540_s20   ;;  %s1148_s14 = sphi %s1537_s14, %s1539_s14   ;;  %s1144_s27 = sphi %s1536_s27, %s1538_s27  }
 0x225   : >> { %713 = vst [vmem:[%s1144_s27] sm:$0xff] %v712_v26  ;;  %v718_v29 = vld [vmem:[%s1148_s14 + $0x18] sm:$0xff]  ;;  %p739_p11 = scmp.ge.s32.totalorder %s738_s22, %s1447_s9  ;;  %v720_v30 = vld [vmem:[%s1148_s14 + $0x20] sm:$0xff]  ;;  %v722_v31 = vld [vmem:[%s1148_s14 + $0x28] sm:$0xff]  ;;  %p705_p12 = scmp.ge.s32.totalorder %s706_s21, %s1447_s9 }
 0x226   : >> { %715 = vst [vmem:[%s1144_s27 + $0x8] sm:$0xff] %v714_v27  ;;  %v724_v32 = vld [vmem:[%s1148_s14 + $0x30] sm:$0xff]  ;;  %v726_v33 = vld [vmem:[%s1148_s14 + $0x38] sm:$0xff]  ;;  %v728_v34 = vld [vmem:[%s1148_s14 + $0x40] sm:$0xff] }
 0x227   : >> { %717 = vst [vmem:[%s1144_s27 + $0x10] sm:$0xff] %v716_v28  ;;  %s1547_s22 = smov (%p739_p11, %s738_s22), 0  ;;  %v730_v35 = vld [vmem:[%s1148_s14 + $0x48] sm:$0xff]  ;;  %v732_v36 = vld [vmem:[%s1148_s14 + $0x50] sm:$0xff]  ;;  %v734_v37 = vld [vmem:[%s1148_s14 + $0x58] sm:$0xff] }
 0x228   : >> { %719 = vst [vmem:[%s1144_s27 + $0x18] sm:$0xff] %v718_v29  ;;  %s741_s23 = smul.u32 104, %s1547_s22  ;;  %v736_v38 = vld [vmem:[%s1148_s14 + $0x60] sm:$0xff]  ;;  %s1540_s20 = smov %s1547_s22 }
 0x229   : >> { %721 = vst [vmem:[%s1144_s27 + $0x20] sm:$0xff] %v720_v30 }
 0x22a   : >> { %723 = vst [vmem:[%s1144_s27 + $0x28] sm:$0xff] %v722_v31  ;;  %s743_s26 = scalar_lea.vmem %s1406_s12, %s741_s23 [#allocation2]   ;;  %s744_s29 = scalar_lea.vmem %s1441_s17, %s741_s23  }
 0x22b   : >> { %725 = vst [vmem:[%s1144_s27 + $0x30] sm:$0xff] %v724_v32  ;;  %s1539_s14 = smov %s743_s26 }
 0x22c   : >> { %727 = vst [vmem:[%s1144_s27 + $0x38] sm:$0xff] %v726_v33 }
 0x22d   : >> { %729 = vst [vmem:[%s1144_s27 + $0x40] sm:$0xff] %v728_v34  ;;  %708 = sbr.rel (!%p705_p12) target bundleno = 548 (0x224), region = 138 }
 0x22e   : >> { %731 = vst [vmem:[%s1144_s27 + $0x48] sm:$0xff] %v730_v35 }
 0x22f   : >> { %733 = vst [vmem:[%s1144_s27 + $0x50] sm:$0xff] %v732_v36 }
 0x230   : >> { %735 = vst [vmem:[%s1144_s27 + $0x58] sm:$0xff] %v734_v37 }
 0x231   : >> { %737 = vst [vmem:[%s1144_s27 + $0x60] sm:$0xff] %v736_v38  ;;  %s1538_s27 = smov %s744_s29 }
 0x232 PF: > { %1083 = sdivrem.u32 %s1545_s24, 13 }
 0x233   : > { %s895_s30 = smul.u32 104, %s1447_s9 }
 0x235   : > { %s1512_s10 = scalar_lea.vmem %s1406_s12, %s895_s30 [#allocation2]   ;;  %s751_s11 = scalar_lea.vmem %s1441_s17, %s895_s30  }
 0x23b   : > { %s1084_s13 = spop.drf %1083 }
 0x23c   : > { %s1085_s15 = spop.drf %1083 }
 0x23d   : > { %p897_p13 = scmp.le.s32.totalorder %s1085_s15, 0 }
 0x23e   : > { %s1158_s16 = smov (!%p897_p13), %s751_s11   ;;  %s1162_s18 = smov (!%p897_p13), %s1512_s10  }
 0x23f   : > { %842 = sbr.rel (%p897_p13) target bundleno = 588 (0x24c), region = 143  ;;  %s1166_s19 = smov (!%p897_p13), 0  }
 0x240   : > { %s1170_s21 = smov (!%p897_p13), 0  }
 0x244 LB: >> { %v761_v39 = vld [vmem:[%s1164_s18] sm:$0xff]  ;;  %s763_s12 = sadd.s32 1, %s1168_s19  ;;  %s755_s21 = sadd.s32 1, %s1172_s21   ;;  %s1172_s21 = sphi %s1170_s21, %s755_s21   ;;  %s1168_s19 = sphi %s1166_s19, %s1167_s19   ;;  %s1164_s18 = sphi %s1162_s18, %s768_s18   ;;  %s1160_s16 = sphi %s1158_s16, %s769_s16  }
 0x245   : >> { %762 = vst [vmem:[%s1160_s16] sm:$0xff] %v761_v39  ;;  %p764_p0 = scmp.ge.s32.totalorder %s763_s12, %s1085_s15  ;;  %p754_p1 = scmp.ge.s32.totalorder %s755_s21, %s1085_s15 }
 0x247   : >> { %s1549_s12 = smov (%p764_p0, %s763_s12), 0  ;;  %757 = sbr.rel (!%p754_p1) target bundleno = 580 (0x244), region = 149 }
 0x248   : >> { %s898_s24 = sshll.u32 %s1549_s12, 3  ;;  %s1167_s19 = smov %s1549_s12  }
 0x249   : >> { %s768_s18 = scalar_lea.vmem %s1512_s10, %s898_s24 [#allocation2]   ;;  %s769_s16 = scalar_lea.vmem %s751_s11, %s898_s24  }
 0x24c PF: > { %p14_p2 = scmp.ge.s32.totalorder %s1229_s28, 4   ;;  %s1541_s24 = smov %s1136_s25 }
 0x24d   : > { %s1542_s25 = smov %s1237_s8  ;;  %s1543_s26 = smov %s1229_s28 }
 0x24e   :  { %16 = sbr.rel (!%p14_p2) target bundleno = 2 (0x2), region = 160 }

</bundles_post_ra>
